<compile_context>
chip_gen: v7x
topology: tpu7x:2x2x1
jax: 0.10.0
libtpu: 0.0.40
codegen_flags: <defaults>
</compile_context>

<pallas_src>
import functools
import math

import jax
import jax.numpy as jnp
from jax import lax
from jax.experimental import pallas as pl
from jax.experimental.pallas import tpu as pltpu


def _vmem_capacity_bytes():
    try:
        return int(pltpu.get_tpu_info().vmem_capacity_bytes)
    except Exception:
        return 64 * 1024 * 1024  # conservative: v7x-sized per-TC VMEM


# ---------------------------------------------------------------------------
# One-time parameter preparation (call at load time, OUTSIDE the jit'd forward)
# ---------------------------------------------------------------------------
def prepare_psych_adapter_params(w, b, *, weight_dtype=None):
    """Pre-transpose W from nn.Linear layout [out_dim, latent] to the
    lane-dense streaming layout [latent, out_dim] and (optionally) cast it
    once to a streaming dtype.

    Doing the cast here -- not per forward call -- is what actually halves HBM
    traffic for bf16 streaming. On v7x, weight_dtype=jnp.float8_e4m3fn halves
    the streamed bytes again (the kernel upcasts the tile on-chip).
    """
    w_t = jnp.asarray(w).T  # [latent, out_dim]
    if weight_dtype is not None:
        w_t = w_t.astype(weight_dtype)
    return jnp.asarray(w_t), jnp.asarray(b, jnp.float32)


# ---------------------------------------------------------------------------
# Pallas kernel: one grid step handles G (layer,k/v) slices.
#   x_ref: [B, latent]   w_ref: [latent, G*KVD]   b_ref: [G, 1, KVD]
#   o_ref: [G, B, KVD]   (already the permuted "past" layout)
# ---------------------------------------------------------------------------
def _adapter_kernel(x_ref, w_ref, b_ref, o_ref):
    g_blk, _, kvd = o_ref.shape
    x = x_ref[...]
    w = w_ref[...]
    if w.dtype != x.dtype:
        # fp8-or-other streaming dtype: upcast the tile on the VPU (free filler,
        # this kernel is HBM-bound). bf16 path matches dtypes in the wrapper.
        w = w.astype(x.dtype)
    acc = lax.dot_general(
        x, w,
        dimension_numbers=(((1,), (0,)), ((), ())),   # contract latent, no transpose
        preferred_element_type=jnp.float32,
    )  # [B, G*KVD] in f32
    bias = b_ref[...].astype(jnp.float32)             # [G, 1, KVD]
    for g in range(g_blk):  # static unroll; stores go straight to permuted layout
        o_ref[g] = (acc[:, g * kvd:(g + 1) * kvd] + bias[g]).astype(o_ref.dtype)


# ---------------------------------------------------------------------------
# Group-size selection: biggest group whose double-buffered tiles fit VMEM,
# preferring >=2 grid steps (v7x megacore) and ~4-8 MiB W buffers.
# ---------------------------------------------------------------------------
def _choose_group(n_l2, kvd, latent, batch, w_itemsize, out_itemsize, vmem_cap):
    budget = int(0.55 * vmem_cap)          # double-buffered working-set budget
    per_w = max(latent * kvd * w_itemsize, 1)
    per_other = batch * kvd * out_itemsize + kvd * 4

    def legal(g):
        # W block last dim is g*kvd: must be a multiple of 128 or the full dim.
        return n_l2 % g == 0 and (g == n_l2 or (g * kvd) % 128 == 0)

    def footprint(g):
        return 2 * g * (per_w + per_other) + 2 * batch * latent * 4

    candidates = [g for g in range(1, n_l2 + 1) if legal(g) and footprint(g) <= budget]
    if not candidates:
        # Smallest layout-legal group (g == n_l2 is always legal).
        return min(g for g in range(1, n_l2 + 1) if legal(g))
    multi = [g for g in candidates if n_l2 // g >= 2]  # keep both v7x TCs busy
    pool = multi or candidates
    target_w = 8 << 20                                 # ~4-8 MiB W buffers
    small_enough = [g for g in pool if g * per_w <= target_w]
    return max(small_enough) if small_enough else min(pool)


# ---------------------------------------------------------------------------
# PsychAdapter adapter forward: fused linear + reshape/transpose into "past".
# `w_t` / `b` must come from prepare_psych_adapter_params().
# Returns past of shape [num_layers, 2, B, num_kv_heads, 1, head_dim].
# ---------------------------------------------------------------------------
def psych_adapter_transform(embeddings, w_t, b, *, num_layers, num_kv_heads,
                            head_dim, out_dtype=None):
    B, latent = embeddings.shape
    latent_w, out_dim = w_t.shape
    kvd = num_kv_heads * head_dim
    n_l2 = num_layers * 2
    assert latent == latent_w, "weight/embedding latent mismatch"
    assert out_dim == n_l2 * kvd, "weight cols must equal L*2*KV*D"
    assert b.shape == (out_dim,)
    # Note: latent not a multiple of 128 only wastes lanes of the x tile
    # (full-dim block exception keeps it legal); W tiles are lane-dense in kvd.

    out_dtype = out_dtype or embeddings.dtype
    x = embeddings
    if w_t.dtype == jnp.bfloat16 and x.dtype != jnp.bfloat16:
        x = x.astype(jnp.bfloat16)   # tiny [B, latent]; match MXU operand dtype

    # Bias pre-shaped to (L*2, 1, KV*D) so its block matches the output layout.
    b3 = b.reshape(n_l2, 1, kvd).astype(jnp.float32)

    vmem_cap = _vmem_capacity_bytes()
    w_isize = jnp.dtype(w_t.dtype).itemsize
    o_isize = jnp.dtype(out_dtype).itemsize
    G = _choose_group(n_l2, kvd, latent, B, w_isize, o_isize, vmem_cap)
    n_steps = n_l2 // G
    w_tile_bytes = latent * G * kvd * w_isize

    # Deepen the W pipeline only for small tiles with enough steps to overlap;
    # keep depth 2 for big tiles (v7x has only 64 MiB VMEM per TC).
    w_spec_kwargs = {}
    w_bufs = 2
    if w_tile_bytes < (2 << 20) and n_steps >= 4:
        w_spec_kwargs["pipeline_mode"] = pl.Buffered(3)
        w_bufs = 3

    def _nb(n, dt):
        return n * jnp.dtype(dt).itemsize

    need = (w_bufs * w_tile_bytes
            + 2 * _nb(G * B * kvd, out_dtype)     # output tiles
            + 2 * _nb(G * kvd, jnp.float32)       # bias tiles
            + 2 * _nb(B * latent, x.dtype)        # x (grid-invariant)
            + (4 << 20))                          # scratch slack
    vmem_limit = int(min(max(need, 32 << 20), int(0.9 * vmem_cap)))

    cost = pl.CostEstimate(
        flops=2 * B * latent * out_dim,
        transcendentals=0,
        bytes_accessed=int(_nb(latent * out_dim, w_t.dtype)
                           + _nb(B * latent, x.dtype)
                           + _nb(n_l2 * B * kvd, out_dtype)
                           + _nb(out_dim, jnp.float32)),
    )

    out = pl.pallas_call(
        _adapter_kernel,
        out_shape=jax.ShapeDtypeStruct((n_l2, B, kvd), out_dtype),
        grid_spec=pltpu.PrefetchScalarGridSpec(
            num_scalar_prefetch=0,
            grid=(n_steps,),
            in_specs=[
                pl.BlockSpec((B, latent), lambda j: (0, 0)),            # x (grid-invariant)
                pl.BlockSpec((latent, G * kvd), lambda j: (0, j),       # W column-group j
                             **w_spec_kwargs),
                pl.BlockSpec((G, 1, kvd), lambda j: (j, 0, 0)),         # bias group j
            ],
            out_specs=pl.BlockSpec((G, B, kvd), lambda j: (j, 0, 0)),   # permuted layout
        ),
        compiler_params=pltpu.CompilerParams(
            dimension_semantics=("parallel",),   # groups are independent (megacore on v7x)
            vmem_limit_bytes=vmem_limit,
        ),
        cost_estimate=cost,
    )(x, w_t, b3)

    # (L*2, B, KV*D) -> (L, 2, B, KV, 1, D): pure reshape, no data movement.
    return out.reshape(num_layers, 2, B, num_kv_heads, 1, head_dim)


# ---------------------------------------------------------------------------
# Reference (plain JAX, mirrors the PyTorch code path) for verification
# ---------------------------------------------------------------------------
def reference_forward(embeddings, w, b, *, num_layers, num_kv_heads, head_dim):
    B = embeddings.shape[0]
    t = embeddings @ w.T + b
    t = t.reshape(B, num_layers, 2, num_kv_heads, 1, head_dim)
    # torch.transpose(., 0, 1) then torch.transpose(., 1, 2)
    return jnp.transpose(t, (1, 2, 0, 3, 4, 5))


if __name__ == "__main__":
    # Small synthetic config consistent with the module's __init__:
    #   out_dim = num_hidden_layers * 2 * num_key_value_heads * head_dim
    latent_size = 32
    num_hidden_layers = 4
    num_key_value_heads = 2
    head_dim = 16
    out_dim = num_hidden_layers * 2 * num_key_value_heads * head_dim  # 256
    batch = 2

    key = jax.random.PRNGKey(0)
    k_emb, k_w, k_b = jax.random.split(key, 3)

    embeddings = jax.random.normal(k_emb, (batch, latent_size), dtype=jnp.float32)
    w = jax.random.normal(k_w, (out_dim, latent_size), dtype=jnp.float32) * 0.02
    b = jax.random.normal(k_b, (out_dim,), dtype=jnp.float32) * 0.02

    fwd = jax.jit(functools.partial(
        psych_adapter_transform,
        num_layers=num_hidden_layers,
        num_kv_heads=num_key_value_heads,
        head_dim=head_dim,
    ))

    # f32 path: weights prepared (pre-transposed) ONCE, outside the jit'd forward.
    w_f32, b_f32 = prepare_psych_adapter_params(w, b)
    past = jax.block_until_ready(fwd(embeddings, w_f32, b_f32))

    ref = reference_forward(
        embeddings, w, b,
        num_layers=num_hidden_layers,
        num_kv_heads=num_key_value_heads,
        head_dim=head_dim,
    )

    assert past.shape == (num_hidden_layers, 2, batch, num_key_value_heads, 1, head_dim)
    assert jnp.allclose(past, ref, atol=1e-5, rtol=1e-5)

    # bf16 weight-streaming path: cast happens ONCE here, not per forward call.
    w_bf16, b_bf16 = prepare_psych_adapter_params(w, b, weight_dtype=jnp.bfloat16)
    past_bf16 = jax.block_until_ready(fwd(embeddings, w_bf16, b_bf16))
    assert past_bf16.shape == ref.shape
    assert jnp.allclose(past_bf16.astype(jnp.float32), ref, atol=5e-3, rtol=5e-2)

    print("KERNEL_OK")
</pallas_src>

<mosaic_0001>
module attributes {stable_mosaic.version = 11 : i64} {
  func.func @_adapter_kernel(%arg0: i32, %arg1: memref<2x32xf32, #tpu.memory_space<vmem>>, %arg2: memref<32x128xf32, #tpu.memory_space<vmem>>, %arg3: memref<4x1x32xf32, #tpu.memory_space<vmem>>, %arg4: memref<4x2x32xf32, #tpu.memory_space<vmem>>) attributes {dimension_semantics = [#tpu.dimension_semantics<parallel>], iteration_bounds = array<i64: 2>, scalar_prefetch = 0 : i64, scratch_operands = 0 : i64, tpu.core_type = #tpu.core_type<tc>, window_params = [{pipeline_mode = #tpu.pipeline_mode<synchronous>, transform_indices = @transform_0, window_bounds = array<i64: 2, 32>}, {transform_indices = @transform_1, window_bounds = array<i64: 32, 128>}, {transform_indices = @transform_2, window_bounds = array<i64: 4, 1, 32>}, {transform_indices = @transform_3, window_bounds = array<i64: 4, 2, 32>}]} {
    %c0 = arith.constant 0 : index
    %c0_0 = arith.constant 0 : index
    %0 = vector.load %arg1[%c0, %c0_0] : memref<2x32xf32, #tpu.memory_space<vmem>>, vector<2x32xf32>
    %c0_1 = arith.constant 0 : index
    %c0_2 = arith.constant 0 : index
    %1 = vector.load %arg2[%c0_1, %c0_2] : memref<32x128xf32, #tpu.memory_space<vmem>>, vector<32x128xf32>
    %cst = arith.constant dense<0.000000e+00> : vector<2x128xf32>
    %2 = tpu.matmul %0, %1, %cst {dimension_numbers = #tpu.dot_dimension_numbers<[1], [0], [0], [1], [0, 0, 1, 1], [], []>} : vector<2x32xf32>, vector<32x128xf32>, vector<2x128xf32> -> vector<2x128xf32>
    %c0_3 = arith.constant 0 : index
    %c0_4 = arith.constant 0 : index
    %c0_5 = arith.constant 0 : index
    %3 = vector.load %arg3[%c0_3, %c0_4, %c0_5] : memref<4x1x32xf32, #tpu.memory_space<vmem>>, vector<4x1x32xf32>
    %4 = vector.extract_strided_slice %2 {offsets = [0, 0], sizes = [2, 32], strides = [1, 1]} : vector<2x128xf32> to vector<2x32xf32>
    %5 = vector.extract_strided_slice %3 {offsets = [0, 0, 0], sizes = [1, 1, 32], strides = [1, 1, 1]} : vector<4x1x32xf32> to vector<1x1x32xf32>
    %6 = vector.shape_cast %5 : vector<1x1x32xf32> to vector<1x32xf32>
    %7 = vector.broadcast %6 : vector<1x32xf32> to vector<2x32xf32>
    %8 = arith.addf %4, %7 : vector<2x32xf32>
    %c0_6 = arith.constant 0 : index
    %c0_7 = arith.constant 0 : index
    %c0_8 = arith.constant 0 : index
    %9 = vector.load %arg4[%c0_6, %c0_7, %c0_8] : memref<4x2x32xf32, #tpu.memory_space<vmem>>, vector<1x2x32xf32>
    %10 = vector.shape_cast %9 : vector<1x2x32xf32> to vector<2x32xf32>
    %11 = vector.shape_cast %8 : vector<2x32xf32> to vector<1x2x32xf32>
    tpu.vector_store %arg4[%c0_6, %c0_7, %c0_8], %11 {strides = array<i32>} : memref<4x2x32xf32, #tpu.memory_space<vmem>>, vector<1x2x32xf32>,
    %12 = vector.extract_strided_slice %2 {offsets = [0, 32], sizes = [2, 32], strides = [1, 1]} : vector<2x128xf32> to vector<2x32xf32>
    %13 = vector.extract_strided_slice %3 {offsets = [1, 0, 0], sizes = [1, 1, 32], strides = [1, 1, 1]} : vector<4x1x32xf32> to vector<1x1x32xf32>
    %14 = vector.shape_cast %13 : vector<1x1x32xf32> to vector<1x32xf32>
    %15 = vector.broadcast %14 : vector<1x32xf32> to vector<2x32xf32>
    %16 = arith.addf %12, %15 : vector<2x32xf32>
    %c1 = arith.constant 1 : index
    %c0_9 = arith.constant 0 : index
    %c0_10 = arith.constant 0 : index
    %17 = vector.load %arg4[%c1, %c0_9, %c0_10] : memref<4x2x32xf32, #tpu.memory_space<vmem>>, vector<1x2x32xf32>
    %18 = vector.shape_cast %17 : vector<1x2x32xf32> to vector<2x32xf32>
    %19 = vector.shape_cast %16 : vector<2x32xf32> to vector<1x2x32xf32>
    tpu.vector_store %arg4[%c1, %c0_9, %c0_10], %19 {strides = array<i32>} : memref<4x2x32xf32, #tpu.memory_space<vmem>>, vector<1x2x32xf32>,
    %20 = vector.extract_strided_slice %2 {offsets = [0, 64], sizes = [2, 32], strides = [1, 1]} : vector<2x128xf32> to vector<2x32xf32>
    %21 = vector.extract_strided_slice %3 {offsets = [2, 0, 0], sizes = [1, 1, 32], strides = [1, 1, 1]} : vector<4x1x32xf32> to vector<1x1x32xf32>
    %22 = vector.shape_cast %21 : vector<1x1x32xf32> to vector<1x32xf32>
    %23 = vector.broadcast %22 : vector<1x32xf32> to vector<2x32xf32>
    %24 = arith.addf %20, %23 : vector<2x32xf32>
    %c2 = arith.constant 2 : index
    %c0_11 = arith.constant 0 : index
    %c0_12 = arith.constant 0 : index
    %25 = vector.load %arg4[%c2, %c0_11, %c0_12] : memref<4x2x32xf32, #tpu.memory_space<vmem>>, vector<1x2x32xf32>
    %26 = vector.shape_cast %25 : vector<1x2x32xf32> to vector<2x32xf32>
    %27 = vector.shape_cast %24 : vector<2x32xf32> to vector<1x2x32xf32>
    tpu.vector_store %arg4[%c2, %c0_11, %c0_12], %27 {strides = array<i32>} : memref<4x2x32xf32, #tpu.memory_space<vmem>>, vector<1x2x32xf32>,
    %28 = vector.extract_strided_slice %2 {offsets = [0, 96], sizes = [2, 32], strides = [1, 1]} : vector<2x128xf32> to vector<2x32xf32>
    %29 = vector.extract_strided_slice %3 {offsets = [3, 0, 0], sizes = [1, 1, 32], strides = [1, 1, 1]} : vector<4x1x32xf32> to vector<1x1x32xf32>
    %30 = vector.shape_cast %29 : vector<1x1x32xf32> to vector<1x32xf32>
    %31 = vector.broadcast %30 : vector<1x32xf32> to vector<2x32xf32>
    %32 = arith.addf %28, %31 : vector<2x32xf32>
    %c3 = arith.constant 3 : index
    %c0_13 = arith.constant 0 : index
    %c0_14 = arith.constant 0 : index
    %33 = vector.load %arg4[%c3, %c0_13, %c0_14] : memref<4x2x32xf32, #tpu.memory_space<vmem>>, vector<1x2x32xf32>
    %34 = vector.shape_cast %33 : vector<1x2x32xf32> to vector<2x32xf32>
    %35 = vector.shape_cast %32 : vector<2x32xf32> to vector<1x2x32xf32>
    tpu.vector_store %arg4[%c3, %c0_13, %c0_14], %35 {strides = array<i32>} : memref<4x2x32xf32, #tpu.memory_space<vmem>>, vector<1x2x32xf32>,
    return
  }
  func.func @transform_0(%arg0: i32) -> (i32, i32) {
    %c0_i32 = arith.constant 0 : i32
    %c0_i32_0 = arith.constant 0 : i32
    %c0_i32_1 = arith.constant 0 : i32
    return %c0_i32, %c0_i32_0 : i32, i32
  }
  func.func @transform_1(%arg0: i32) -> (i32, i32) {
    %c0_i32 = arith.constant 0 : i32
    %c0_i32_0 = arith.constant 0 : i32
    return %c0_i32, %arg0 : i32, i32
  }
  func.func @transform_2(%arg0: i32) -> (i32, i32, i32) {
    %c0_i32 = arith.constant 0 : i32
    %c0_i32_0 = arith.constant 0 : i32
    %c0_i32_1 = arith.constant 0 : i32
    return %arg0, %c0_i32, %c0_i32_0 : i32, i32, i32
  }
  func.func @transform_3(%arg0: i32) -> (i32, i32, i32) {
    %c0_i32 = arith.constant 0 : i32
    %c0_i32_0 = arith.constant 0 : i32
    %c0_i32_1 = arith.constant 0 : i32
    return %arg0, %c0_i32, %c0_i32_0 : i32, i32, i32
  }
}

</mosaic_0001>

<bundles_post_ra>
// kernel: psych_adapter_transform.1
= control target key start
LH: loop header
LB: loop body
LE: loop exit
PB: predicated region body
PF: predicated region fallthrough
CT: control target
= control target key end

     0   :  { %8 = vsyncpa [#allocation3], 0  ;;  %s727_s0 = inlined_call_operand.vmem [shape: f32[2,32], index: 0, kind: input, shape index: {}]   ;;  %s728_s1 = inlined_call_operand.hbm [shape: f32[32,256], index: 1, kind: input, shape index: {}]   ;;  %s729_s2 = inlined_call_operand.vmem [shape: f32[8,1,32], index: 2, kind: input, shape index: {}]   ;;  %s730_s3 = inlined_call_operand.vmem [shape: f32[8,2,32], index: 3, kind: output, shape index: {}]  }
   0x1   :  { %10 = vsyncpa [#allocation3 + $0x1], 0  ;;  %s610_s12 = smov 0   ;;  %s612_s13 = smov 0  }
   0x2   :  { %s614_s14 = smov 0   ;;  %s616_s15 = smov 0  }
   0x3 LB: > { %s423_s16 = sadd.s32 4294967295, %s578_s15   ;;  %s630_s17 = sadd.s32 1, %s578_s15   ;;  %s578_s15 = sphi %s616_s15, %s736_s15   ;;  %s574_s14 = sphi %s614_s14, %s735_s14   ;;  %s570_s13 = sphi %s612_s13, %s734_s13   ;;  %s566_s12 = sphi %s610_s12, %s733_s12  }
   0x4   : > { %s41_s18 = ssub.s32 %s578_s15, %s630_s17  ;;  %s44_s19 = sadd.s32 1, %s574_s14 }
   0x5   : > { %p42_p0 = scmp.eq.s32.totalorder %s41_s18, 0  ;;  %p51_p1 = scmp.ne.s32.totalorder %s574_s14, %s570_s13 }
   0x6   : > { %p52_p2 = scmp.eq.s32.totalorder %s578_s15, 0  ;;  %p57_p3 = scmp.ne.s32.totalorder %s570_s13, %s566_s12 }
   0x7   : > { %s640_s20 = scalar_select %p42_p0, %s574_s14, %s44_s19  }
   0x8   : > { %p53_p4 = por %p52_p2, %p51_p1  ;;  %p58_p5 = scmp.eq.s32.totalorder %s423_s16, 0 }
   0x9   : > { %p472_p6 = scmp.lt.s32.totalorder %s578_s15, 2  ;;  %s136_s22 = sand.u32 1, %s574_s14  }
   0xa   : > { %p645_p7 = por %p58_p5, %p57_p3  ;;  %s427_s23 = sshll.u32 %s136_s22, 5 }
   0xb   : > { %s428_s24 = sshll.u32 %s578_s15, 7  ;;  %s140_s28 = scalar_lea.vmem [#allocation2], %s427_s23 }
   0xc   : > { %s654_s27 = scalar_lea.hbm %s728_s1, %s428_s24  ;;  %s146_s29 = sshll.u32 %s140_s28, 4  ;;  %s656_s29 = int_to_ptr.vmem [resolvable:$true] %s146_s29 }
   0xd   : > { %p658_p8 = pnand %p472_p6, %p53_p4  ;;  %s662_s4 = scalar_lea.sflag [#allocation3], %s136_s22 }
   0xe   : > { %s514_s5 = scalar_lea.hbm %s654_s27, 512  ;;  %s519_s8 = scalar_lea.hbm %s728_s1, 1024 }
   0xf   : > { %p515_p9 = scmp.ne.s32.totalorder %s654_s27, %s514_s5  ;;  %p516_p10 = pneg %p658_p8 }
  0x10   : > { %p520_p13 = scmp.lt.u32.totalorder %s654_s27, %s728_s1  ;;  %p521_p0 = scmp.lt.u32.totalorder %s519_s8, %s514_s5 }
  0x11   : > { %p517_p11 = pnand %p516_p10, %p515_p9  ;;  %p523_p2 = scmp.lt.u32.totalorder %s514_s5, %s654_s27 }
  0x12   : > { %p522_p1 = por %p521_p0, %p520_p13 }
  0x13   : > { %p518_p12 = pneg %p517_p11 }
  0x14   : > { %p524_p3 = por %p523_p2, %p522_p1 }
  0x16   : > { %p525_p4 = pnand %p524_p3, %p518_p12 }
  0x18   : > { %528 = shalt.err (!%p525_p4)
}
  0x19   : > { %s529_s11 = scalar_lea.vmem %s656_s29, 512  ;;  %s580_s12 = smov [#allocation2]  }
  0x1a   : > { %p530_p5 = scmp.ne.s32.totalorder %s656_s29, %s529_s11  ;;  %s534_s18 = sshll.u32 %s580_s12, 4  ;;  %s535_s18 = int_to_ptr.vmem [resolvable:$false] %s534_s18 }
  0x1b   : > { %s536_s19 = scalar_lea.vmem %s535_s18, 1024  ;;  %p537_p11 = scmp.lt.s32.totalorder %s656_s29, %s535_s18 }
  0x1c   : > { %p532_p6 = pnand %p530_p5, %p516_p10  ;;  %p538_p13 = scmp.lt.s32.totalorder %s536_s19, %s529_s11 }
  0x1e   : > { %p533_p9 = pneg %p532_p6  ;;  %p539_p0 = por %p538_p13, %p537_p11 }
  0x20   : > { %p540_p1 = pnand %p539_p0, %p533_p9 }
  0x22   : > { %543 = shalt.err (!%p540_p1)
}
  0x23   : > { %s581_s22 = smov 256   ;;  %s582_s23 = smov 128  }
  0x24   : > { %s583_s24 = smov 8   ;;  %p429_p10 = scmp.ge.s32.totalorder %s578_s15, 1 }
  0x25   : > { %471 = dma.hbm_to_vmem [thread:$0]  (!%p658_p8), %s654_s27, 512, %s656_s29, %s662_s4, %s581_s22, %s582_s23, %s583_s24  }
  0x26   : > { %p162_p12 = scmp.lt.s32.totalorder %s578_s15, 3 }
  0x28   : > { %p163_p2 = pnand %p429_p10, %p162_p12 }
  0x29   : > { %s168_s25 = sand.u32 (!%p163_p2), 1, %s570_s13  }
  0x2a   : > { %166 = sbr.rel (%p163_p2) target bundleno = 395 (0x18b), region = 32  ;;  %s430_s26 = sshll.u32 (!%p163_p2), %s168_s25, 5 }
  0x2b   : > { %s169_s28 = scalar_lea.sflag (!%p163_p2), [#allocation3], %s168_s25  ;;  %s172_s5 = scalar_lea.vmem (!%p163_p2), [#allocation2], %s430_s26 }
  0x31   : > { %561 = dma.done.wait (%p645_p7), %s169_s28, 512  }
  0x32   : > { %563 = vsyncadd (%p645_p7), %s169_s28, 4294966784  ;;  %s431_s6 = sshll.u32 %s423_s16, 2  ;;  %v584_v0 = vmov 0.0|0.0   ;;  %vm585_vm0 = vmmov 0   ;;  %v586_v1 = vmov 0.0   ;;  %v211_v2 = vld [vmem:[%s172_s5] sm:$0xff] }
  0x33   : > { %460 = vmatprep.subr.bf16.mxu0 %v584_v0  ;;  %457 = vmatprep.mubr.msk.f32.mxu0 %vm585_vm0, %v586_v1  ;;  %p200_p8 = scmp.lt.s32.totalorder %s431_s6, 7  ;;  %v212_v3 = vld [vmem:[%s172_s5 + $0x8] sm:$0xff]  ;;  %v213_v4 = vld [vmem:[%s172_s5 + $0x10] sm:$0xff]  ;;  %v214_v6 = vld [vmem:[%s172_s5 + $0x18] sm:$0xff]  ;;  %s587_s21 = smov 32   ;;  %vm215_vm1 = vcmask 261120  }
  0x34   : > { %v461_v5 = vpack.c.bf16 %v212_v3, %v211_v2  ;;  %v464_v9 = vpack.c.bf16 %v214_v6, %v213_v4  ;;  %s588_s15 = smov 96   ;;  %s589_s16 = smov 64   ;;  %v210_v11 = vld [vmem:[%s727_s0] sm:$0x3]  ;;  %vm300_vm2 = vcmask 254976  }
  0x35   : > { %s738_s6 = smov (!%p200_p8, %s431_s6), 7 }
  0x36   : > { %s202_s30 = scalar_lea.vmem %s729_s2, %s738_s6  ;;  %462 = vmatpush3.bf16.msra.mxu0 %v461_v5  ;;  %s433_s8 = sshll.u32 %s738_s6, 1 }
  0x37   : > { %v436_v7 = vld [vmem:[%s202_s30 + $0x1] ss:$0 sm:$0xff]  ;;  %v440_v8 = vld [vmem:[%s202_s30 + $0x3] ss:$0 sm:$0xff]  ;;  %v438_v10 = vld [vmem:[%s202_s30 + $0x2] ss:$0 sm:$0xff]  ;;  %463 = vmatprep.subr.bf16.mxu0 %v584_v0  ;;  %s208_s11 = scalar_lea.vmem %s730_s3, %s433_s8 }
  0x38   : > { %307 = vrot.lane.b32.xlu0 %v436_v7, %s587_s21  ;;  %337 = vrot.lane.b32.xlu1 %v440_v8, %s588_s15  ;;  %v435_v14 = vld [vmem:[%s202_s30] ss:$0 sm:$0xff] }
  0x3a   : > { %465 = vmatpush3.bf16.msra.mxu0 %v464_v9 }
  0x3c   : > { %322 = vrot.lane.b32.xlu0 %v438_v10, %s589_s16 }
  0x3d   : > { %458 = vmatmul.mubr.msk.f32.vlgmr.msra.gmra.mrb[0].mxu0 %vm215_vm1, %v210_v11 }
  0xaa   : > { %v308_v12 = vpop.permute.xlu0 %307  ;;  %v338_v20 = vpop.permute.xlu1 %337 }
  0xae   : > { %v323_v13 = vpop.permute.xlu0 %322 }
 0x110   : > { %v285_v15 = vpop.f32.mrb[0].mxu0 }
 0x111   : > { %v299_v16 = vadd.f32 %v435_v14, %v285_v15  ;;  %v459_v17 = vpop.f32.mrb[1].mxu0  ;;  %v325_v18 = vadd.f32 %v323_v13, %v285_v15  ;;  %v310_v19 = vadd.f32 %v308_v12, %v285_v15  ;;  %v340_v21 = vadd.f32 %v338_v20, %v285_v15 }
 0x113   : > { %327 = vrot.lane.b32.xlu0 %v325_v18, %s589_s16  ;;  %312 = vrot.lane.b32.xlu1 %v310_v19, %s588_s15  ;;  %301 = vst.msk [vmem:[%s208_s11] sm:$0x3] %vm300_vm2, %v299_v16 }
 0x117   : > { %342 = vrot.lane.b32.xlu1 %v340_v21, %s587_s21 }
 0x185   : > { %v328_v22 = vpop.permute.xlu0 %327  ;;  %v313_v23 = vpop.permute.xlu1 %312 }
 0x186   : > { %437 = vst.msk [vmem:[%s208_s11 + $0x2] sm:$0x3] %vm300_vm2, %v313_v23  ;;  %439 = vst.msk [vmem:[%s208_s11 + $0x4] sm:$0x3] %vm300_vm2, %v328_v22 }
 0x189   : > { %v343_v24 = vpop.permute.xlu1 %342 }
 0x18a   : > { %441 = vst.msk [vmem:[%s208_s11 + $0x6] sm:$0x3] %vm300_vm2, %v343_v24 }
 0x18b PF: > { %p13_p7 = scmp.ge.s32.totalorder %s630_s17, 4   ;;  %s733_s12 = smov %s570_s13 }
 0x18c   : > { %s734_s13 = smov %s574_s14  ;;  %s735_s14 = smov %s640_s20 }
 0x18d   : > { %s736_s15 = smov %s630_s17  ;;  %15 = sbr.rel (!%p13_p7) target bundleno = 3 (0x3), region = 78 }
 0x194   :  { %369 = vsyncpa [#allocation3], 1 }
 0x195   :  { %371 = vsyncpa [#allocation3 + $0x1], 1 }

</bundles_post_ra>
